<compile_context>
chip_gen: v7x
topology: tpu7x:2x2x1
jax: 0.10.0
libtpu: 0.0.40
codegen_flags: <defaults>
</compile_context>

<pallas_src>
import functools

import jax
import jax.numpy as jnp
from jax.experimental import pallas as pl
from jax.experimental.pallas import tpu as pltpu


def _item_regression_kernel(w_ref, rb_ref, bias_ref, o_ref, *, inv_k):
    # w_ref, rb_ref : (K, TB) bf16 -- neighborhood on sublanes, batch on lanes.
    # bias_ref, o_ref : (1, TB) f32 -- precomputed b_user[u] + b_item[t] / output.
    w = w_ref[...].astype(jnp.float32)          # explicit f32 upcast (v5e-safe)
    rb = rb_ref[...].astype(jnp.float32)
    dot = jnp.sum(w * rb, axis=0, keepdims=True)        # (1, TB) XLU reduce
    o_ref[...] = bias_ref[...] + dot * inv_k             # lane-dense store


def _round_up(x, m):
    return ((x + m - 1) // m) * m


def item_regression_forward(u_idx, t_idx, weight, b_user, b_item,
                            rating_matrix, qtus, neighborhood_size,
                            *, batch_tile=32768, slab_dtype=jnp.bfloat16):
    """Pallas-backed forward for ItemRegressionModel.

    u_idx, t_idx : (B,) int32 user / target-item indices.
    weight       : (I, I) float32
    b_user       : (U,)   float32
    b_item       : (I,)   float32
    rating_matrix: (U, I) float32
    qtus         : (U, I, K) int32 neighbor item indices
    Returns (B,) float32.
    """
    B = int(u_idx.shape[0])
    K = int(qtus.shape[-1])

    # ---- tile sizing: big tiles to amortize per-step overhead, but keep the
    # grid >= 2 steps so both v7x TensorCores get work. Always a multiple of
    # 128 lanes; non-divisible B is handled by padding the indices below. ----
    batch_tile = _round_up(max(int(batch_tile), 128), 128)
    b_pad128 = _round_up(B, 128)
    half_tile = _round_up(pl.cdiv(b_pad128, 2), 128)
    bt = min(batch_tile, half_tile)
    b_pad = _round_up(B, bt)
    pad = b_pad - B

    # ---- pad the (cheap) index vectors BEFORE the gathers, so the big slabs
    # come out of the gather already padded (index 0 is always valid). ----
    if pad:
        u_idx = jnp.pad(u_idx, (0, pad))
        t_idx = jnp.pad(t_idx, (0, pad))

    # ---- glue: data-dependent gathers, produced directly in the lane-dense
    # (K, B) layout (no transpose pass over the float slabs). b_user and
    # b_item[qtu] are folded into the residual slab; bias terms pre-summed. ----
    qtu_t = qtus[u_idx, t_idx].T                                   # (K, b_pad) int32
    w_t = weight[qtu_t, t_idx[None, :]].astype(slab_dtype)         # (K, b_pad)
    rb_t = (rating_matrix[u_idx[None, :], qtu_t]
            - b_user[u_idx][None, :]
            - b_item[qtu_t]).astype(slab_dtype)                    # (K, b_pad)
    bias_t = (b_user[u_idx] + b_item[t_idx]).astype(jnp.float32)[None, :]  # (1, b_pad)

    kernel = functools.partial(_item_regression_kernel,
                               inv_k=float(1.0 / neighborhood_size))

    slab_spec = pl.BlockSpec((K, bt), lambda i: (0, i))
    row_spec = pl.BlockSpec((1, bt), lambda i: (0, i))

    # Double-buffered footprint of one step (2 bf16 slabs + 2 f32 rows), with
    # headroom; capped at 32 MiB (v7x scoped default on its 64 MiB VMEM).
    slab_itemsize = jnp.dtype(slab_dtype).itemsize
    block_bytes = 2 * K * bt * slab_itemsize + 2 * bt * 4
    vmem_limit = int(min(max(4 * block_bytes, 4 * 1024 * 1024),
                         32 * 1024 * 1024))

    cost = pl.CostEstimate(
        flops=2 * K * b_pad + 2 * b_pad,
        transcendentals=0,
        bytes_accessed=(2 * K * slab_itemsize + 4 + 4) * b_pad,
    )

    out = pl.pallas_call(
        kernel,
        out_shape=jax.ShapeDtypeStruct((1, b_pad), jnp.float32),
        grid_spec=pltpu.PrefetchScalarGridSpec(
            num_scalar_prefetch=0,
            grid=(b_pad // bt,),
            in_specs=[slab_spec, slab_spec, row_spec],
            out_specs=row_spec,
        ),
        compiler_params=pltpu.CompilerParams(
            dimension_semantics=("parallel",),
            vmem_limit_bytes=vmem_limit),
        cost_estimate=cost,
    )(w_t, rb_t, bias_t)

    return out[0, :B]


def _reference_forward(u_idx, t_idx, weight, b_user, b_item,
                       rating_matrix, qtus, neighborhood_size):
    qtu = qtus[u_idx, t_idx]
    w_jt = weight[qtu, t_idx[:, None]]
    r_uj = rating_matrix[u_idx[:, None], qtu]
    bu = b_user[u_idx]
    bi = b_item[t_idx]
    resid = r_uj - bu[:, None] - b_item[qtu]
    return bu + bi + jnp.sum(w_jt * resid, axis=-1) / neighborhood_size


def _reference_forward_matched(u_idx, t_idx, weight, b_user, b_item,
                               rating_matrix, qtus, neighborhood_size,
                               slab_dtype=jnp.bfloat16):
    # Mirrors the kernel's numerics (bf16 slabs, f32 accumulate) exactly.
    qtu = qtus[u_idx, t_idx]
    w_jt = weight[qtu, t_idx[:, None]].astype(slab_dtype).astype(jnp.float32)
    resid = (rating_matrix[u_idx[:, None], qtu]
             - b_user[u_idx][:, None]
             - b_item[qtu]).astype(slab_dtype).astype(jnp.float32)
    bias = b_user[u_idx] + b_item[t_idx]
    return bias + jnp.sum(w_jt * resid, axis=-1) * (1.0 / neighborhood_size)


if __name__ == "__main__":
    key = jax.random.PRNGKey(0)
    k_w, k_bu, k_bi, k_rm, k_q, k_u, k_t = jax.random.split(key, 7)

    users_count = 8
    items_count = 16
    neighborhood_size = 8
    batch = 200                      # not a multiple of 128 -> padded tail

    # Deterministic synthetic parameters (mirroring __init__ shapes/inits).
    # kaiming_normal_ on (I, I): std = sqrt(2 / fan_in)
    weight = (jax.random.normal(k_w, (items_count, items_count), jnp.float32)
              * jnp.sqrt(2.0 / items_count))
    b_user = jax.random.normal(k_bu, (users_count,), jnp.float32)
    b_item = jax.random.normal(k_bi, (items_count,), jnp.float32)

    # Synthetic rating matrix and precomputed neighborhoods (qtus).
    rating_matrix = jax.random.uniform(
        k_rm, (users_count, items_count), jnp.float32, minval=1.0, maxval=5.0)
    qtus = jax.random.randint(
        k_q, (users_count, items_count, neighborhood_size), 0, items_count,
        dtype=jnp.int32)

    # Batch of (user, item) index pairs — the PyTorch forward's `x`.
    u_idx = jax.random.randint(k_u, (batch,), 0, users_count, dtype=jnp.int32)
    t_idx = jax.random.randint(k_t, (batch,), 0, items_count, dtype=jnp.int32)

    # Default batch_tile is capped to half the padded batch, so this runs a
    # 2-step grid (exercises tiling, the padded tail, and megacore sharding).
    out = item_regression_forward(
        u_idx, t_idx, weight, b_user, b_item, rating_matrix, qtus,
        neighborhood_size)
    out = jax.block_until_ready(out)
    assert out.shape == (batch,)

    # Loose check vs. the full-f32 reference (bf16 slab rounding) ...
    ref = _reference_forward(u_idx, t_idx, weight, b_user, b_item,
                             rating_matrix, qtus, neighborhood_size)
    assert jnp.allclose(out, ref, atol=1e-1, rtol=1e-2)

    # ... and a tight check vs. a numerics-matched (bf16-slab) reference.
    ref_bf16 = _reference_forward_matched(u_idx, t_idx, weight, b_user, b_item,
                                          rating_matrix, qtus,
                                          neighborhood_size)
    assert jnp.allclose(out, ref_bf16, atol=1e-5, rtol=1e-5)

    print("KERNEL_OK")
</pallas_src>

<mosaic_0001>
module attributes {stable_mosaic.version = 11 : i64} {
  func.func @_item_regression_kernel(%arg0: i32, %arg1: memref<8x128xbf16, #tpu.memory_space<vmem>>, %arg2: memref<8x128xbf16, #tpu.memory_space<vmem>>, %arg3: memref<1x128xf32, #tpu.memory_space<vmem>>, %arg4: memref<1x128xf32, #tpu.memory_space<vmem>>) attributes {dimension_semantics = [#tpu.dimension_semantics<parallel>], iteration_bounds = array<i64: 2>, scalar_prefetch = 0 : i64, scratch_operands = 0 : i64, tpu.core_type = #tpu.core_type<tc>, window_params = [{transform_indices = @transform_0, window_bounds = array<i64: 8, 128>}, {transform_indices = @transform_1, window_bounds = array<i64: 8, 128>}, {transform_indices = @transform_2, window_bounds = array<i64: 1, 128>}, {transform_indices = @transform_3, window_bounds = array<i64: 1, 128>}]} {
    %c0 = arith.constant 0 : index
    %c0_0 = arith.constant 0 : index
    %0 = vector.load %arg1[%c0, %c0_0] : memref<8x128xbf16, #tpu.memory_space<vmem>>, vector<8x128xbf16>
    %1 = arith.extf %0 : vector<8x128xbf16> to vector<8x128xf32>
    %c0_1 = arith.constant 0 : index
    %c0_2 = arith.constant 0 : index
    %2 = vector.load %arg2[%c0_1, %c0_2] : memref<8x128xbf16, #tpu.memory_space<vmem>>, vector<8x128xbf16>
    %3 = arith.extf %2 : vector<8x128xbf16> to vector<8x128xf32>
    %4 = arith.mulf %1, %3 : vector<8x128xf32>
    %cst = arith.constant dense<0.000000e+00> : vector<128xf32>
    %5 = vector.multi_reduction <add>, %4, %cst [0] : vector<8x128xf32> to vector<128xf32>
    %6 = vector.shape_cast %5 : vector<128xf32> to vector<1x128xf32>
    %c0_3 = arith.constant 0 : index
    %c0_4 = arith.constant 0 : index
    %7 = vector.load %arg3[%c0_3, %c0_4] : memref<1x128xf32, #tpu.memory_space<vmem>>, vector<1x128xf32>
    %cst_5 = arith.constant 1.250000e-01 : f32
    %8 = vector.broadcast %cst_5 : f32 to vector<1x128xf32>
    %9 = arith.mulf %6, %8 : vector<1x128xf32>
    %10 = arith.addf %7, %9 : vector<1x128xf32>
    %c0_6 = arith.constant 0 : index
    %c0_7 = arith.constant 0 : index
    %11 = vector.load %arg4[%c0_6, %c0_7] : memref<1x128xf32, #tpu.memory_space<vmem>>, vector<1x128xf32>
    tpu.vector_store %arg4[%c0_6, %c0_7], %10 {strides = array<i32>} : memref<1x128xf32, #tpu.memory_space<vmem>>, vector<1x128xf32>,
    return
  }
  func.func @transform_0(%arg0: i32) -> (i32, i32) {
    %c0_i32 = arith.constant 0 : i32
    %c0_i32_0 = arith.constant 0 : i32
    return %c0_i32, %arg0 : i32, i32
  }
  func.func @transform_1(%arg0: i32) -> (i32, i32) {
    %c0_i32 = arith.constant 0 : i32
    %c0_i32_0 = arith.constant 0 : i32
    return %c0_i32, %arg0 : i32, i32
  }
  func.func @transform_2(%arg0: i32) -> (i32, i32) {
    %c0_i32 = arith.constant 0 : i32
    %c0_i32_0 = arith.constant 0 : i32
    return %c0_i32, %arg0 : i32, i32
  }
  func.func @transform_3(%arg0: i32) -> (i32, i32) {
    %c0_i32 = arith.constant 0 : i32
    %c0_i32_0 = arith.constant 0 : i32
    return %c0_i32, %arg0 : i32, i32
  }
}

</mosaic_0001>

<bundles_post_ra>
// kernel: tpu_custom_call.1
= control target key start
LH: loop header
LB: loop body
LE: loop exit
PB: predicated region body
PF: predicated region fallthrough
CT: control target
= control target key end

     0   :  { %8 = vsyncpa [#allocation3], 0  ;;  %s796_s0 = inlined_call_operand.hbm [shape: bf16[8,256], index: 0, kind: input, shape index: {}]   ;;  %s797_s1 = inlined_call_operand.hbm [shape: bf16[8,256], index: 1, kind: input, shape index: {}]   ;;  %s798_s2 = inlined_call_operand.vmem [shape: f32[1,256], index: 2, kind: input, shape index: {}]   ;;  %s799_s3 = inlined_call_operand.hbm [shape: f32[1,256], index: 3, kind: output, shape index: {}]  }
   0x1   :  { %10 = vsyncpa [#allocation3 + $0x1], 0 }
   0x2   :  { %11 = vsyncpa [#allocation6], 0 }
   0x3   :  { %13 = vsyncpa [#allocation6 + $0x1], 0 }
   0x4   :  { %14 = vsyncpa [#allocation4], 0 }
   0x5   :  { %16 = vsyncpa [#allocation4 + $0x1], 0  ;;  %s581_s12 = smov 0   ;;  %s583_s13 = smov 0  }
   0x6   :  { %s585_s14 = smov 0   ;;  %s587_s15 = smov 0  }
   0x7 LB: > { %s602_s16 = sadd.s32 4294967295, %s556_s15   ;;  %s362_s17 = sadd.s32 4294967294, %s556_s15   ;;  %s556_s15 = sphi %s587_s15, %s818_s15   ;;  %s552_s14 = sphi %s585_s14, %s817_s14   ;;  %s548_s13 = sphi %s583_s13, %s816_s13   ;;  %s544_s12 = sphi %s581_s12, %s815_s12  }
   0x8   : > { %s606_s18 = sadd.s32 1, %s556_s15   ;;  %s29_s19 = sadd.s32 1, %s552_s14 }
   0x9   : > { %s26_s20 = ssub.s32 %s556_s15, %s606_s18  ;;  %p36_p0 = scmp.ne.s32.totalorder %s552_s14, %s548_s13 }
   0xa   : > { %p27_p1 = scmp.eq.s32.totalorder %s26_s20, 0  ;;  %p37_p2 = scmp.eq.s32.totalorder %s556_s15, 0 }
   0xb   : > { %p42_p3 = scmp.ne.s32.totalorder %s548_s13, %s544_s12  ;;  %p43_p4 = scmp.eq.s32.totalorder %s602_s16, 0 }
   0xc   : > { %s618_s21 = scalar_select %p27_p1, %s552_s14, %s29_s19  }
   0xd   : > { %p620_p5 = por %p37_p2, %p36_p0  ;;  %p624_p6 = por %p43_p4, %p42_p3 }
   0xe   : > { %p118_p7 = scmp.eq.s32.totalorder %s602_s16, 1  ;;  %p124_p8 = scmp.eq.s32.totalorder %s362_s17, 1 }
   0xf   : > { %s803_s23 = scalar_select %p624_p6, 1, 0 }
  0x10   : > { %p392_p10 = scmp.lt.s32.totalorder %s556_s15, 2  ;;  %p631_p11 = por %p118_p7, %p36_p0 }
  0x11   : > { %p635_p12 = por %p124_p8, %p42_p3  ;;  %s640_s26 = sand.u32 1, %s552_s14  }
  0x12   : > { %s804_s24 = scalar_select %p631_p11, 1, 0 }
  0x13   : > { %s805_s25 = scalar_select %p635_p12, 1, 0 }
  0x14   : > { %s366_s27 = sshll.u32 %s556_s15, 6  ;;  %s365_s28 = sshll.u32 %s640_s26, 2 }
  0x15   : > { %s649_s4 = scalar_lea.hbm %s796_s0, %s366_s27  ;;  %s148_s5 = scalar_lea.vmem [#allocation2], %s365_s28 }
  0x16   : > { %s155_s6 = sshll.u32 %s148_s5, 4  ;;  %p655_p13 = pnand %p392_p10, %p620_p5  ;;  %s659_s6 = int_to_ptr.vmem [resolvable:$true] %s155_s6 }
  0x17   : > { %s145_s8 = scalar_lea.sflag [#allocation3], %s640_s26  ;;  %s426_s9 = scalar_lea.hbm %s649_s4, 64 }
  0x18   : > { %p427_p2 = scmp.ne.s32.totalorder %s649_s4, %s426_s9  ;;  %p428_p3 = pneg %p655_p13 }
  0x19   : > { %s431_s17 = scalar_lea.hbm %s796_s0, 128  ;;  %p432_p5 = scmp.lt.u32.totalorder %s649_s4, %s796_s0 }
  0x1a   : > { %p429_p4 = pnand %p428_p3, %p427_p2  ;;  %p433_p8 = scmp.lt.u32.totalorder %s431_s17, %s426_s9 }
  0x1b   : > { %p435_p9 = scmp.lt.u32.totalorder %s426_s9, %s649_s4 }
  0x1c   : > { %p430_p7 = pneg %p429_p4  ;;  %p434_p10 = por %p433_p8, %p432_p5 }
  0x1e   : > { %p436_p0 = por %p435_p9, %p434_p10 }
  0x20   : > { %p437_p1 = pnand %p436_p0, %p430_p7 }
  0x22   : > { %440 = shalt.err (!%p437_p1)
}
  0x23   : > { %s441_s22 = scalar_lea.vmem %s659_s6, 64  ;;  %s558_s29 = smov [#allocation2]  }
  0x24   : > { %p442_p2 = scmp.ne.s32.totalorder %s659_s6, %s441_s22  ;;  %s446_s30 = sshll.u32 %s558_s29, 4  ;;  %s447_s30 = int_to_ptr.vmem [resolvable:$false] %s446_s30 }
  0x25   : > { %s448_s5 = scalar_lea.vmem %s447_s30, 128  ;;  %p449_p11 = scmp.lt.s32.totalorder %s659_s6, %s447_s30 }
  0x26   : > { %p444_p4 = pnand %p442_p2, %p428_p3  ;;  %p450_p5 = scmp.lt.s32.totalorder %s448_s5, %s441_s22 }
  0x28   : > { %p445_p12 = pneg %p444_p4  ;;  %p451_p8 = por %p450_p5, %p449_p11 }
  0x2a   : > { %p452_p9 = pnand %p451_p8, %p445_p12 }
  0x2c   : > { %455 = shalt.err (!%p452_p9)
}
  0x2d   : > { %384 = dma.hbm_to_vmem [thread:$0]  (!%p655_p13), %s649_s4, 64, %s659_s6, %s145_s8  }
  0x2e   : > { %p807_p0 = scmp.lt.s32.totalorder %s556_s15, 3  ;;  %p808_p1 = scmp.ge.s32.totalorder %s556_s15, 1 }
  0x2f   : > { %s702_s17 = scalar_lea.hbm %s797_s1, %s366_s27  ;;  %s166_s19 = scalar_lea.vmem [#allocation5], %s365_s28 }
  0x30   : > { %p693_p7 = pnand %p808_p1, %p807_p0  ;;  %s173_s20 = sshll.u32 %s166_s19, 4  ;;  %s174_s20 = int_to_ptr.vmem [resolvable:$true] %s173_s20 }
  0x31   : > { %s163_s4 = scalar_lea.sflag [#allocation6], %s640_s26  ;;  %s456_s6 = scalar_lea.hbm %s702_s17, 64 }
  0x32   : > { %s809_s9 = scalar_select %p693_p7, 1, 0 }
  0x33   : > { %p457_p11 = scmp.ne.s32.totalorder %s702_s17, %s456_s6  ;;  %s461_s27 = scalar_lea.hbm %s797_s1, 128 }
  0x34   : > { %p462_p2 = scmp.lt.u32.totalorder %s702_s17, %s797_s1  ;;  %p463_p4 = scmp.lt.u32.totalorder %s461_s27, %s456_s6 }
  0x35   : > { %p459_p12 = pnand %p457_p11, %p428_p3  ;;  %p465_p8 = scmp.lt.u32.totalorder %s456_s6, %s702_s17 }
  0x36   : > { %p464_p5 = por %p463_p4, %p462_p2 }
  0x37   : > { %p460_p10 = pneg %p459_p12 }
  0x38   : > { %p466_p9 = por %p465_p8, %p464_p5 }
  0x3a   : > { %p467_p0 = pnand %p466_p9, %p460_p10 }
  0x3c   : > { %470 = shalt.err (!%p467_p0)
}
  0x3d   : > { %s471_s26 = scalar_lea.vmem %s174_s20, 64  ;;  %s559_s28 = smov [#allocation5]  }
  0x3e   : > { %p472_p1 = scmp.ne.s32.totalorder %s174_s20, %s471_s26  ;;  %s476_s5 = sshll.u32 %s559_s28, 4  ;;  %s477_s5 = int_to_ptr.vmem [resolvable:$false] %s476_s5 }
  0x3f   : > { %s478_s10 = scalar_lea.vmem %s477_s5, 128  ;;  %p479_p6 = scmp.lt.s32.totalorder %s174_s20, %s477_s5 }
  0x40   : > { %p474_p11 = pnand %p472_p1, %p428_p3  ;;  %p480_p7 = scmp.lt.s32.totalorder %s478_s10, %s471_s26 }
  0x42   : > { %p475_p12 = pneg %p474_p11  ;;  %p481_p2 = por %p480_p7, %p479_p6 }
  0x44   : > { %p482_p4 = pnand %p481_p2, %p475_p12 }
  0x46   : > { %485 = shalt.err (!%p482_p4)
}
  0x47   : > { %387 = dma.hbm_to_vmem [thread:$0]  (!%p655_p13), %s702_s17, 64, %s174_s20, %s163_s4  }
  0x48   : > { %p810_p10 = scmp.ne.s32.totalorder %s809_s9, 0 }
  0x49   : > { %s729_s11 = sand.u32 (!%p810_p10), 1, %s548_s13   ;;  %p811_p3 = scmp.ne.s32.totalorder (!%p810_p10), %s803_s23, 0 }
  0x4a   : > { %188 = sbr.rel (%p810_p10) target bundleno = 119 (0x77), region = 32  ;;  %s370_s19 = sshll.u32 (!%p810_p10), %s729_s11, 2 }
  0x4b   : > { %s191_s6 = scalar_lea.sflag (!%p810_p10), [#allocation3], %s729_s11  ;;  %s194_s8 = scalar_lea.vmem (!%p810_p10), [#allocation2], %s370_s19 }
  0x51   : > { %531 = dma.done.wait (%p811_p3), %s191_s6, 64  }
  0x52   : > { %533 = vsyncadd (%p811_p3), %s191_s6, 4294967232  ;;  %s200_s7 = scalar_lea.sflag [#allocation6], %s729_s11  ;;  %s203_s17 = scalar_lea.vmem [#allocation5], %s370_s19 }
  0x53   : > { %535 = dma.done.wait (%p811_p3), %s200_s7, 64  }
  0x54   : > { %537 = vsyncadd (%p811_p3), %s200_s7, 4294967232  ;;  %v236_v0 = vld [vmem:[%s194_s8] sm:$0xf]  ;;  %v238_v1 = vld [vmem:[%s203_s17] sm:$0xf]  ;;  %p233_p6 = scmp.lt.s32.totalorder %s602_s16, 1 }
  0x55   : > { %v237_v2 = vunpack.c.l.bf16 %v236_v0  ;;  %v239_v3 = vunpack.c.l.bf16 %v238_v1  ;;  %s232_s22 = scalar_lea.vmem [#allocation7], %s729_s11  ;;  %s372_s29 = sshll.u32 %s602_s16, 4 }
  0x56   : > { %s234_s9 = scalar_select %p233_p6, %s602_s16, 1 }
  0x57   : > { %v240_v4 = vmul.f32 %v239_v3, %v237_v2  ;;  %s264_s27 = sshll.u32 %s232_s22, 4  ;;  %s754_s28 = scalar_lea.hbm %s799_s3, %s372_s29  ;;  %s749_s27 = int_to_ptr.vmem [resolvable:$true] %s264_s27 }
  0x58   : > { %s235_s23 = scalar_lea.vmem %s798_s2, %s234_s9  ;;  %s252_s5 = scalar_lea.sflag [#allocation4], %s729_s11 }
  0x59   : > { %v241_v5 = vrot.slane %v240_v4, 4  ;;  %v247_v11 = vld [vmem:[%s235_s23] sm:$0x1]  ;;  %s486_s10 = scalar_lea.vmem %s749_s27, 16  ;;  %p812_p7 = scmp.ne.s32.totalorder %s804_s24, 0 }
  0x5a   : > { %p487_p13 = scmp.ne.s32.totalorder %s749_s27, %s486_s10  ;;  %s560_s16 = smov [#allocation7]  }
  0x5b   : > { %v242_v6 = vadd.f32 %v241_v5, %v240_v4  ;;  %s490_s19 = sshll.u32 %s560_s16, 4  ;;  %s491_s19 = int_to_ptr.vmem [resolvable:$false] %s490_s19 }
  0x5c   : > { %p488_p5 = pnand %p487_p13, %p812_p7  ;;  %s492_s6 = scalar_lea.vmem %s491_s19, 32 }
  0x5d   : > { %v243_v7 = vrot.slane %v242_v6, 2  ;;  %p493_p9 = scmp.lt.s32.totalorder %s749_s27, %s491_s19  ;;  %p494_p0 = scmp.lt.s32.totalorder %s492_s6, %s486_s10 }
  0x5e   : > { %p489_p8 = pneg %p488_p5 }
  0x5f   : > { %v244_v8 = vadd.f32 %v243_v7, %v242_v6  ;;  %p495_p1 = por %p494_p0, %p493_p9 }
  0x61   : > { %v245_v9 = vrot.slane %v244_v8, 1  ;;  %p496_p11 = pnand %p495_p1, %p489_p8 }
  0x63   : > { %v246_v10 = vadd.f32 %v245_v9, %v244_v8 }
  0x65   : > { %v248_v12 = vmul.f32 0.125, %v246_v10 }
  0x67   : > { %v249_v13 = vadd.f32 %v248_v12, %v247_v11 }
  0x69   : > { %250 = vst [vmem:[%s232_s22] sm:$0x1] %v249_v13 }
  0x6a   : > { %499 = shalt.err (!%p496_p11)
}
  0x6b   : > { %s500_s11 = scalar_lea.hbm %s754_s28, 16  ;;  %s504_s17 = scalar_lea.hbm %s799_s3, 32 }
  0x6c   : > { %p501_p12 = scmp.ne.s32.totalorder %s754_s28, %s500_s11  ;;  %p505_p10 = scmp.lt.u32.totalorder %s754_s28, %s799_s3 }
  0x6d   : > { %p506_p3 = scmp.lt.u32.totalorder %s504_s17, %s500_s11  ;;  %p508_p13 = scmp.lt.u32.totalorder %s500_s11, %s754_s28 }
  0x6e   : > { %p502_p2 = pnand %p501_p12, %p812_p7 }
  0x6f   : > { %p507_p6 = por %p506_p3, %p505_p10 }
  0x70   : > { %p503_p4 = pneg %p502_p2 }
  0x71   : > { %p509_p5 = por %p508_p13, %p507_p6 }
  0x73   : > { %p510_p8 = pnand %p509_p5, %p503_p4 }
  0x75   : > { %513 = shalt.err (!%p510_p8)
}
  0x76   : > { %379 = dma.vmem_to_hbm [thread:$0]  (%p812_p7), %s749_s27, 16, %s754_s28, %s252_s5  }
  0x77 PF: > { %s276_s4 = sand.u32 1, %s544_s12   ;;  %p813_p9 = scmp.ne.s32.totalorder %s805_s25, 0 }
  0x78   : > { %p814_p0 = scmp.ge.s32.totalorder %s556_s15, 2  ;;  %s277_s23 = scalar_lea.sflag [#allocation4], %s276_s4 }
  0x7a   : > { %p389_p1 = pnand %p814_p0, %p813_p9 }
  0x7c   : > { %539 = dma.done.wait (!%p389_p1), %s277_s23, 16  }
  0x7d   : > { %541 = vsyncadd (!%p389_p1), %s277_s23, 4294967280  ;;  %p19_p11 = scmp.ge.s32.totalorder %s606_s18, 4   ;;  %s815_s12 = smov %s548_s13 }
  0x7e   : > { %s816_s13 = smov %s552_s14  ;;  %s817_s14 = smov %s618_s21 }
  0x7f   : > { %s818_s15 = smov %s606_s18  ;;  %21 = sbr.rel (!%p19_p11) target bundleno = 7 (0x7), region = 93 }
  0x86   :  { %281 = vsyncpa [#allocation3], 1 }
  0x87   :  { %283 = vsyncpa [#allocation3 + $0x1], 1 }
  0x88   :  { %284 = vsyncpa [#allocation6], 1 }
  0x89   :  { %286 = vsyncpa [#allocation6 + $0x1], 1 }
  0x8a   :  { %287 = vsyncpa [#allocation4], 1 }
  0x8b   :  { %289 = vsyncpa [#allocation4 + $0x1], 1 }

</bundles_post_ra>
